<compile_context>
chip_gen: v7x
topology: tpu7x:2x2x1
jax: 0.10.0
libtpu: 0.0.40
codegen_flags: <defaults>
</compile_context>

<pallas_src>
import functools

import jax
import jax.numpy as jnp
from jax.experimental import pallas as pl
from jax.experimental.pallas import tpu as pltpu


def _cdiv(a, b):
    return (a + b - 1) // b


def _round_up(n, m):
    return _cdiv(n, m) * m


# -----------------------------------------------------------------------------
# Kernels
# -----------------------------------------------------------------------------
def _tower(h_bf16, params):
    """num_mlps x (Linear + ReLU) then a final Linear.

    bf16 MXU operands, f32 accumulation / bias / ReLU."""
    num_mlps = (len(params) - 2) // 2
    h = h_bf16
    for l in range(num_mlps):
        w = params[2 * l][...]
        b = params[2 * l + 1][...]
        h = jnp.maximum(
            jnp.dot(h, w, preferred_element_type=jnp.float32) + b, 0.0
        ).astype(jnp.bfloat16)
    return (jnp.dot(h, params[-2][...], preferred_element_type=jnp.float32)
            + params[-1][...])


def _gating_graph_tower_kernel(gx_ref, ny_ref, g1_ref, g2_ref, *rest):
    """output_graph = g1*graph_X + g2*node_Y ; logit = Tower_graph(output_graph)."""
    gw, logit_ref = rest[:-1], rest[-1]
    x = g1_ref[...] * gx_ref[...] + g2_ref[...] * ny_ref[...]   # f32 VPU gating
    logit_ref[...] = _tower(x.astype(jnp.bfloat16), gw)


def _node_tower_kernel(fn, nx_ref, *rest):
    """node_logit_tile = Tower_node(node_feature_tile) for one row tile."""
    nw = rest[:-2]
    out_ref = rest[-2]
    pad_ref = rest[-1]                           # VMEM scratch (tile, FN_PAD) bf16
    # Build the lane-aligned (tile, FN_PAD) MXU operand inside VMEM: zero the
    # padding lanes, then (masked) store the streamed (tile, FN) tile. Cheap VPU
    # / VMEM work, hidden under the HBM DMA of the next tile.
    pad_ref[...] = jnp.zeros_like(pad_ref)
    pad_ref[:, :fn] = nx_ref[...].astype(jnp.bfloat16)
    out = _tower(pad_ref[...], nw)
    out_ref[...] = out.astype(out_ref.dtype)     # bf16 lane-dense writeback


# -----------------------------------------------------------------------------
# One-time parameter preparation (module-init time, NOT per forward call)
# -----------------------------------------------------------------------------
def prepare_tower_params(params, in_pad, lane_pad=128):
    """Pads a [W1, b1, ..., Wf, bf] Tower to MXU-aligned shapes; weights -> bf16."""
    num_mlps = (len(params) - 2) // 2
    out = []
    for l in range(num_mlps):
        w, b = params[2 * l], params[2 * l + 1]
        k_pad = in_pad if l == 0 else lane_pad
        w_p = jnp.zeros((k_pad, lane_pad), jnp.float32)
        w_p = w_p.at[:w.shape[0], :w.shape[1]].set(w)
        b_p = jnp.zeros((1, lane_pad), jnp.float32).at[:, :b.shape[1]].set(b)
        out += [w_p.astype(jnp.bfloat16), b_p]
    wf, bf = params[-2], params[-1]
    k_final = lane_pad if num_mlps > 0 else in_pad
    wf_p = jnp.zeros((k_final, lane_pad), jnp.float32)
    wf_p = wf_p.at[:wf.shape[0], :wf.shape[1]].set(wf)
    bf_p = jnp.zeros((1, lane_pad), jnp.float32).at[:, :bf.shape[1]].set(bf)
    out += [wf_p.astype(jnp.bfloat16), bf_p]
    return out


def prepare_gate_param(theta, in_pad):
    """Pads a (1, F) gate parameter to (1, in_pad) f32 (once, at init)."""
    return jnp.zeros((1, in_pad), jnp.float32).at[:, :theta.shape[1]].set(theta)


# -----------------------------------------------------------------------------
# Generation-aware tiling helpers
# -----------------------------------------------------------------------------
def _vmem_capacity_bytes():
    try:
        cap = int(pltpu.get_tpu_info().vmem_capacity_bytes)
        if cap > 0:
            return cap
    except Exception:
        pass
    return 64 * 1024 * 1024          # conservative: v7x has 64 MiB per TensorCore


def _choose_tiling(rows, sublane, tile_m):
    tile_m = max(sublane, _round_up(tile_m, sublane))
    # >=2 tiles whenever there is enough work so v7x's two TensorCores both get
    # rows under dimension_semantics=("parallel",).
    min_tiles = 2 if rows > sublane else 1
    num_tiles = max(min_tiles, _cdiv(rows, tile_m))
    tile = min(tile_m, _round_up(_cdiv(rows, num_tiles), sublane))
    num_tiles = _cdiv(rows, tile)
    return num_tiles, tile


# -----------------------------------------------------------------------------
# Forward wrapper
# -----------------------------------------------------------------------------
def gating_mechanism_forward(graph_x, node_y, node_no_mean,
                             gate_theta_1, gate_theta_2,
                             graph_tower_params, node_tower_params,
                             num_classes, *, tile_m=None):
    """GatingMechanism forward (minus the undefined experts).

    graph_x:       (B, 4*H)    f32       -- Expert_graph output
    node_y:        (B, 4*H)    f32       -- Expert_node "x" output
    node_no_mean:  (B, S, 2*H) f32/bf16  -- Expert_node "node_x" output; streamed
                                             in its native dtype (bf16 halves HBM).
    *_tower_params / gate_theta_*: outputs of prepare_* (padded, bf16 weights).
    Returns (logit (B, C) f32, node_logit (B, S, C) f32).
    """
    B, FG = graph_x.shape
    Bn, S, FN = node_no_mean.shape
    FG_PAD = graph_tower_params[0].shape[0]      # 896
    FN_PAD = node_tower_params[0].shape[0]       # 512
    C_PAD = node_tower_params[-1].shape[1]       # 128 (lane-dense logit width)

    vmem_cap = _vmem_capacity_bytes()
    if tile_m is None:
        tile_m = 8192 if vmem_cap >= 96 * 1024 * 1024 else 4096

    # ---- (1) gating + Tower_graph: one tiny tile, hoisted out of the row grid --
    B_PAD = _round_up(B, 8)
    gx = jnp.zeros((B_PAD, FG_PAD), jnp.float32).at[:B, :FG].set(graph_x)
    ny = jnp.zeros((B_PAD, FG_PAD), jnp.float32).at[:B, :FG].set(node_y)

    logit_pad = pl.pallas_call(
        _gating_graph_tower_kernel,
        grid=(1,),
        in_specs=[pl.BlockSpec(a.shape, lambda i: (0, 0))
                  for a in (gx, ny, gate_theta_1, gate_theta_2)]
                 + [pl.BlockSpec(w.shape, lambda i: (0, 0))
                    for w in graph_tower_params],
        out_specs=pl.BlockSpec((B_PAD, C_PAD), lambda i: (0, 0)),
        out_shape=jax.ShapeDtypeStruct((B_PAD, C_PAD), jnp.float32),
        compiler_params=pltpu.CompilerParams(
            dimension_semantics=("arbitrary",)),
    )(gx, ny, gate_theta_1, gate_theta_2, *graph_tower_params)
    logit = logit_pad[:B, :num_classes]

    # ---- (2) Tower_node: stream the flattened node features -------------------
    rows = Bn * S
    node_flat = node_no_mean.reshape(rows, FN)   # free view; no padded HBM copy
    in_bytes = node_flat.dtype.itemsize
    sublane = max(8, 32 // in_bytes)             # 8 for f32, 16 for bf16
    num_tiles, tile = _choose_tiling(rows, sublane, tile_m)
    rows_alloc = num_tiles * tile                # >= rows; at most tiny overshoot

    weight_bytes = sum(int(w.size) * w.dtype.itemsize for w in node_tower_params)
    per_step = tile * (FN * in_bytes + C_PAD * 2)        # in block + bf16 out block
    vmem_need = (2 * per_step                             # double-buffered blocks
                 + tile * FN_PAD * 2                      # in-kernel pad scratch
                 + 2 * weight_bytes
                 + 16 * 1024 * 1024)                      # headroom
    vmem_limit = min(vmem_cap * 3 // 4, max(32 * 1024 * 1024, vmem_need))

    node_logit_pad = pl.pallas_call(
        functools.partial(_node_tower_kernel, FN),
        grid=(num_tiles,),
        in_specs=[pl.BlockSpec((tile, FN), lambda i: (i, 0))]
                 + [pl.BlockSpec(w.shape, lambda i: (0, 0))
                    for w in node_tower_params],
        out_specs=pl.BlockSpec((tile, C_PAD), lambda i: (i, 0)),
        out_shape=jax.ShapeDtypeStruct((rows_alloc, C_PAD), jnp.bfloat16),
        scratch_shapes=[pltpu.VMEM((tile, FN_PAD), jnp.bfloat16)],
        compiler_params=pltpu.CompilerParams(
            dimension_semantics=("parallel",),
            vmem_limit_bytes=int(vmem_limit)),
    )(node_flat, *node_tower_params)

    node_logit = (node_logit_pad[:rows, :num_classes]
                  .astype(jnp.float32)
                  .reshape(Bn, S, num_classes))
    return logit, node_logit


# -----------------------------------------------------------------------------
# Deterministic parameter construction (unpadded f32, PyTorch-equivalent)
# -----------------------------------------------------------------------------
def _xavier_uniform(key, fan_in, fan_out, shape):
    bound = jnp.sqrt(6.0 / (fan_in + fan_out))
    return jax.random.uniform(key, shape, jnp.float32, -bound, bound)


def make_params(key, in_dim, final_hidden, num_classes, num_mlps):
    """Builds (W, b) list for a Tower: num_mlps Linear+ReLU then final Linear."""
    params = []
    dims = [in_dim] + [final_hidden] * num_mlps
    for l in range(num_mlps):
        key, kw = jax.random.split(key)
        w = _xavier_uniform(kw, dims[l], dims[l + 1], (dims[l], dims[l + 1]))
        b = jnp.zeros((1, dims[l + 1]), jnp.float32)
        params += [w, b]
    key, kw = jax.random.split(key)
    wf = _xavier_uniform(kw, final_hidden, num_classes, (final_hidden, num_classes))
    bf = jnp.zeros((1, num_classes), jnp.float32)
    params += [wf, bf]
    return params, key


# -----------------------------------------------------------------------------
# Pure-JAX reference (same bf16-operand / f32-accumulate math as the kernels)
# -----------------------------------------------------------------------------
def _ref_tower(x, params):
    num_mlps = (len(params) - 2) // 2
    h = x.astype(jnp.bfloat16)
    for l in range(num_mlps):
        w = params[2 * l].astype(jnp.bfloat16)
        b = params[2 * l + 1]
        h = jnp.maximum(
            jnp.dot(h, w, preferred_element_type=jnp.float32) + b, 0.0
        ).astype(jnp.bfloat16)
    return (jnp.dot(h, params[-2].astype(jnp.bfloat16),
                    preferred_element_type=jnp.float32) + params[-1])


def _ref_forward(graph_x, node_y, node_no_mean, g1, g2, gp, np_, C):
    out_graph = g1 * graph_x + g2 * node_y
    logit = _ref_tower(out_graph, gp)
    B, S, F = node_no_mean.shape
    node_logit = _ref_tower(node_no_mean.reshape(B * S, F), np_)
    # kernel writes node logits back in bf16 -> match that rounding
    node_logit = node_logit.astype(jnp.bfloat16).astype(jnp.float32)
    return logit, node_logit.reshape(B, S, C)


# -----------------------------------------------------------------------------
if __name__ == "__main__":
    # Module-implied sizes: gate_theta is Parameter(1, 800) => hidden_size*4 = 800.
    hidden_size = 200
    graph_feat = hidden_size * 4      # 800  (Tower_graph / gating width)
    node_feat = hidden_size * 2       # 400  (Tower_node width)
    B = 2                             # batch
    S = 32                            # sequence length -> 64 node rows (2-tile grid)
    final_hidden = 64
    num_classes = 3
    num_mlps = 2

    key = jax.random.PRNGKey(0)

    # Gate parameters (Parameter(1, 800), xavier_uniform).
    key, k1, k2 = jax.random.split(key, 3)
    gate_theta_1 = _xavier_uniform(k1, 1, graph_feat, (1, graph_feat))
    gate_theta_2 = _xavier_uniform(k2, 1, graph_feat, (1, graph_feat))

    # Tower parameters (unpadded f32, PyTorch-equivalent).
    graph_tower_params, key = make_params(key, graph_feat, final_hidden,
                                          num_classes, num_mlps)
    node_tower_params, key = make_params(key, node_feat, final_hidden,
                                         num_classes, num_mlps)

    # One-time (init) padding / bf16 conversion of the static module state.
    FG_PAD = _round_up(graph_feat, 128)          # 800 -> 896
    FN_PAD = _round_up(node_feat, 128)           # 400 -> 512
    graph_tower_prepped = prepare_tower_params(graph_tower_params, FG_PAD)
    node_tower_prepped = prepare_tower_params(node_tower_params, FN_PAD)
    gate1_prepped = prepare_gate_param(gate_theta_1, FG_PAD)
    gate2_prepped = prepare_gate_param(gate_theta_2, FG_PAD)

    # Synthetic expert outputs (dropout at eval = identity).  The dominant node
    # features are streamed in bf16 (half the HBM read).
    key, kx, ky, kn = jax.random.split(key, 4)
    graph_x = jax.random.normal(kx, (B, graph_feat), jnp.float32)
    node_y = jax.random.normal(ky, (B, graph_feat), jnp.float32)
    node_no_mean = jax.random.normal(
        kn, (B, S, node_feat), jnp.float32).astype(jnp.bfloat16)

    fwd = jax.jit(functools.partial(gating_mechanism_forward,
                                    num_classes=num_classes))
    logit, node_logit = fwd(graph_x, node_y, node_no_mean,
                            gate1_prepped, gate2_prepped,
                            graph_tower_prepped, node_tower_prepped)
    jax.block_until_ready((logit, node_logit))

    # Correctness check vs. pure-JAX reference (same bf16-operand math).
    ref_logit, ref_node_logit = _ref_forward(
        graph_x, node_y, node_no_mean, gate_theta_1, gate_theta_2,
        graph_tower_params, node_tower_params, num_classes)
    assert logit.shape == (B, num_classes)
    assert node_logit.shape == (B, S, num_classes)
    assert jnp.allclose(logit, ref_logit, atol=1e-2, rtol=1e-2)
    assert jnp.allclose(node_logit, ref_node_logit, atol=1e-2, rtol=1e-2)

    print("KERNEL_OK")
</pallas_src>

<mosaic_0001>
module attributes {stable_mosaic.version = 11 : i64} {
  func.func @_gating_graph_tower_kernel(%arg0: i32, %arg1: memref<8x896xf32, #tpu.memory_space<vmem>>, %arg2: memref<8x896xf32, #tpu.memory_space<vmem>>, %arg3: memref<1x896xf32, #tpu.memory_space<vmem>>, %arg4: memref<1x896xf32, #tpu.memory_space<vmem>>, %arg5: memref<896x128xbf16, #tpu.memory_space<vmem>>, %arg6: memref<1x128xf32, #tpu.memory_space<vmem>>, %arg7: memref<128x128xbf16, #tpu.memory_space<vmem>>, %arg8: memref<1x128xf32, #tpu.memory_space<vmem>>, %arg9: memref<128x128xbf16, #tpu.memory_space<vmem>>, %arg10: memref<1x128xf32, #tpu.memory_space<vmem>>, %arg11: memref<8x128xf32, #tpu.memory_space<vmem>>) attributes {dimension_semantics = [#tpu.dimension_semantics<arbitrary>], iteration_bounds = array<i64: 1>, scalar_prefetch = 0 : i64, scratch_operands = 0 : i64, tpu.core_type = #tpu.core_type<tc>, window_params = [{pipeline_mode = #tpu.pipeline_mode<synchronous>, transform_indices = @transform_0, window_bounds = array<i64: 8, 896>}, {pipeline_mode = #tpu.pipeline_mode<synchronous>, transform_indices = @transform_1, window_bounds = array<i64: 8, 896>}, {pipeline_mode = #tpu.pipeline_mode<synchronous>, transform_indices = @transform_2, window_bounds = array<i64: 1, 896>}, {pipeline_mode = #tpu.pipeline_mode<synchronous>, transform_indices = @transform_3, window_bounds = array<i64: 1, 896>}, {pipeline_mode = #tpu.pipeline_mode<synchronous>, transform_indices = @transform_4, window_bounds = array<i64: 896, 128>}, {pipeline_mode = #tpu.pipeline_mode<synchronous>, transform_indices = @transform_5, window_bounds = array<i64: 1, 128>}, {pipeline_mode = #tpu.pipeline_mode<synchronous>, transform_indices = @transform_6, window_bounds = array<i64: 128, 128>}, {pipeline_mode = #tpu.pipeline_mode<synchronous>, transform_indices = @transform_7, window_bounds = array<i64: 1, 128>}, {pipeline_mode = #tpu.pipeline_mode<synchronous>, transform_indices = @transform_8, window_bounds = array<i64: 128, 128>}, {pipeline_mode = #tpu.pipeline_mode<synchronous>, transform_indices = @transform_9, window_bounds = array<i64: 1, 128>}, {pipeline_mode = #tpu.pipeline_mode<synchronous>, transform_indices = @transform_10, window_bounds = array<i64: 8, 128>}]} {
    %c0 = arith.constant 0 : index
    %c0_0 = arith.constant 0 : index
    %0 = vector.load %arg3[%c0, %c0_0] : memref<1x896xf32, #tpu.memory_space<vmem>>, vector<1x896xf32>
    %c0_1 = arith.constant 0 : index
    %c0_2 = arith.constant 0 : index
    %1 = vector.load %arg1[%c0_1, %c0_2] : memref<8x896xf32, #tpu.memory_space<vmem>>, vector<8x896xf32>
    %2 = vector.broadcast %0 : vector<1x896xf32> to vector<8x896xf32>
    %3 = arith.mulf %2, %1 : vector<8x896xf32>
    %c0_3 = arith.constant 0 : index
    %c0_4 = arith.constant 0 : index
    %4 = vector.load %arg4[%c0_3, %c0_4] : memref<1x896xf32, #tpu.memory_space<vmem>>, vector<1x896xf32>
    %c0_5 = arith.constant 0 : index
    %c0_6 = arith.constant 0 : index
    %5 = vector.load %arg2[%c0_5, %c0_6] : memref<8x896xf32, #tpu.memory_space<vmem>>, vector<8x896xf32>
    %6 = vector.broadcast %4 : vector<1x896xf32> to vector<8x896xf32>
    %7 = arith.mulf %6, %5 : vector<8x896xf32>
    %8 = arith.addf %3, %7 : vector<8x896xf32>
    %9 = arith.truncf %8 : vector<8x896xf32> to vector<8x896xbf16>
    %c0_7 = arith.constant 0 : index
    %c0_8 = arith.constant 0 : index
    %10 = vector.load %arg5[%c0_7, %c0_8] : memref<896x128xbf16, #tpu.memory_space<vmem>>, vector<896x128xbf16>
    %c0_9 = arith.constant 0 : index
    %c0_10 = arith.constant 0 : index
    %11 = vector.load %arg6[%c0_9, %c0_10] : memref<1x128xf32, #tpu.memory_space<vmem>>, vector<1x128xf32>
    %cst = arith.constant dense<0.000000e+00> : vector<8x128xf32>
    %12 = tpu.matmul %9, %10, %cst {dimension_numbers = #tpu.dot_dimension_numbers<[1], [0], [0], [1], [0, 0, 1, 1], [], []>} : vector<8x896xbf16>, vector<896x128xbf16>, vector<8x128xf32> -> vector<8x128xf32>
    %13 = vector.broadcast %11 : vector<1x128xf32> to vector<8x128xf32>
    %14 = arith.addf %12, %13 : vector<8x128xf32>
    %cst_11 = arith.constant 0.000000e+00 : f32
    %15 = vector.broadcast %cst_11 : f32 to vector<8x128xf32>
    %16 = arith.maximumf %14, %15 : vector<8x128xf32>
    %17 = arith.truncf %16 : vector<8x128xf32> to vector<8x128xbf16>
    %c0_12 = arith.constant 0 : index
    %c0_13 = arith.constant 0 : index
    %18 = vector.load %arg7[%c0_12, %c0_13] : memref<128x128xbf16, #tpu.memory_space<vmem>>, vector<128x128xbf16>
    %c0_14 = arith.constant 0 : index
    %c0_15 = arith.constant 0 : index
    %19 = vector.load %arg8[%c0_14, %c0_15] : memref<1x128xf32, #tpu.memory_space<vmem>>, vector<1x128xf32>
    %cst_16 = arith.constant dense<0.000000e+00> : vector<8x128xf32>
    %20 = tpu.matmul %17, %18, %cst_16 {dimension_numbers = #tpu.dot_dimension_numbers<[1], [0], [0], [1], [0, 0, 1, 1], [], []>} : vector<8x128xbf16>, vector<128x128xbf16>, vector<8x128xf32> -> vector<8x128xf32>
    %21 = vector.broadcast %19 : vector<1x128xf32> to vector<8x128xf32>
    %22 = arith.addf %20, %21 : vector<8x128xf32>
    %cst_17 = arith.constant 0.000000e+00 : f32
    %23 = vector.broadcast %cst_17 : f32 to vector<8x128xf32>
    %24 = arith.maximumf %22, %23 : vector<8x128xf32>
    %25 = arith.truncf %24 : vector<8x128xf32> to vector<8x128xbf16>
    %c0_18 = arith.constant 0 : index
    %c0_19 = arith.constant 0 : index
    %26 = vector.load %arg9[%c0_18, %c0_19] : memref<128x128xbf16, #tpu.memory_space<vmem>>, vector<128x128xbf16>
    %cst_20 = arith.constant dense<0.000000e+00> : vector<8x128xf32>
    %27 = tpu.matmul %25, %26, %cst_20 {dimension_numbers = #tpu.dot_dimension_numbers<[1], [0], [0], [1], [0, 0, 1, 1], [], []>} : vector<8x128xbf16>, vector<128x128xbf16>, vector<8x128xf32> -> vector<8x128xf32>
    %c0_21 = arith.constant 0 : index
    %c0_22 = arith.constant 0 : index
    %28 = vector.load %arg10[%c0_21, %c0_22] : memref<1x128xf32, #tpu.memory_space<vmem>>, vector<1x128xf32>
    %29 = vector.broadcast %28 : vector<1x128xf32> to vector<8x128xf32>
    %30 = arith.addf %27, %29 : vector<8x128xf32>
    %c0_23 = arith.constant 0 : index
    %c0_24 = arith.constant 0 : index
    %31 = vector.load %arg11[%c0_23, %c0_24] : memref<8x128xf32, #tpu.memory_space<vmem>>, vector<8x128xf32>
    tpu.vector_store %arg11[%c0_23, %c0_24], %30 {strides = array<i32>} : memref<8x128xf32, #tpu.memory_space<vmem>>, vector<8x128xf32>,
    return
  }
  func.func @transform_0(%arg0: i32) -> (i32, i32) {
    %c0_i32 = arith.constant 0 : i32
    %c0_i32_0 = arith.constant 0 : i32
    %c0_i32_1 = arith.constant 0 : i32
    return %c0_i32, %c0_i32_0 : i32, i32
  }
  func.func @transform_1(%arg0: i32) -> (i32, i32) {
    %c0_i32 = arith.constant 0 : i32
    %c0_i32_0 = arith.constant 0 : i32
    %c0_i32_1 = arith.constant 0 : i32
    return %c0_i32, %c0_i32_0 : i32, i32
  }
  func.func @transform_2(%arg0: i32) -> (i32, i32) {
    %c0_i32 = arith.constant 0 : i32
    %c0_i32_0 = arith.constant 0 : i32
    %c0_i32_1 = arith.constant 0 : i32
    return %c0_i32, %c0_i32_0 : i32, i32
  }
  func.func @transform_3(%arg0: i32) -> (i32, i32) {
    %c0_i32 = arith.constant 0 : i32
    %c0_i32_0 = arith.constant 0 : i32
    %c0_i32_1 = arith.constant 0 : i32
    return %c0_i32, %c0_i32_0 : i32, i32
  }
  func.func @transform_4(%arg0: i32) -> (i32, i32) {
    %c0_i32 = arith.constant 0 : i32
    %c0_i32_0 = arith.constant 0 : i32
    %c0_i32_1 = arith.constant 0 : i32
    return %c0_i32, %c0_i32_0 : i32, i32
  }
  func.func @transform_5(%arg0: i32) -> (i32, i32) {
    %c0_i32 = arith.constant 0 : i32
    %c0_i32_0 = arith.constant 0 : i32
    %c0_i32_1 = arith.constant 0 : i32
    return %c0_i32, %c0_i32_0 : i32, i32
  }
  func.func @transform_6(%arg0: i32) -> (i32, i32) {
    %c0_i32 = arith.constant 0 : i32
    %c0_i32_0 = arith.constant 0 : i32
    %c0_i32_1 = arith.constant 0 : i32
    return %c0_i32, %c0_i32_0 : i32, i32
  }
  func.func @transform_7(%arg0: i32) -> (i32, i32) {
    %c0_i32 = arith.constant 0 : i32
    %c0_i32_0 = arith.constant 0 : i32
    %c0_i32_1 = arith.constant 0 : i32
    return %c0_i32, %c0_i32_0 : i32, i32
  }
  func.func @transform_8(%arg0: i32) -> (i32, i32) {
    %c0_i32 = arith.constant 0 : i32
    %c0_i32_0 = arith.constant 0 : i32
    %c0_i32_1 = arith.constant 0 : i32
    return %c0_i32, %c0_i32_0 : i32, i32
  }
  func.func @transform_9(%arg0: i32) -> (i32, i32) {
    %c0_i32 = arith.constant 0 : i32
    %c0_i32_0 = arith.constant 0 : i32
    %c0_i32_1 = arith.constant 0 : i32
    return %c0_i32, %c0_i32_0 : i32, i32
  }
  func.func @transform_10(%arg0: i32) -> (i32, i32) {
    %c0_i32 = arith.constant 0 : i32
    %c0_i32_0 = arith.constant 0 : i32
    %c0_i32_1 = arith.constant 0 : i32
    return %c0_i32, %c0_i32_0 : i32, i32
  }
}

module attributes {stable_mosaic.version = 11 : i64} {
  func.func @_node_tower_kernel(%arg0: i32, %arg1: memref<32x400xbf16, #tpu.memory_space<vmem>>, %arg2: memref<512x128xbf16, #tpu.memory_space<vmem>>, %arg3: memref<1x128xf32, #tpu.memory_space<vmem>>, %arg4: memref<128x128xbf16, #tpu.memory_space<vmem>>, %arg5: memref<1x128xf32, #tpu.memory_space<vmem>>, %arg6: memref<128x128xbf16, #tpu.memory_space<vmem>>, %arg7: memref<1x128xf32, #tpu.memory_space<vmem>>, %arg8: memref<32x128xbf16, #tpu.memory_space<vmem>>, %arg9: memref<32x512xbf16, #tpu.memory_space<vmem>>) attributes {dimension_semantics = [#tpu.dimension_semantics<parallel>], iteration_bounds = array<i64: 2>, scalar_prefetch = 0 : i64, scratch_operands = 1 : i64, tpu.core_type = #tpu.core_type<tc>, window_params = [{transform_indices = @transform_0, window_bounds = array<i64: 32, 400>}, {pipeline_mode = #tpu.pipeline_mode<synchronous>, transform_indices = @transform_1, window_bounds = array<i64: 512, 128>}, {pipeline_mode = #tpu.pipeline_mode<synchronous>, transform_indices = @transform_2, window_bounds = array<i64: 1, 128>}, {pipeline_mode = #tpu.pipeline_mode<synchronous>, transform_indices = @transform_3, window_bounds = array<i64: 128, 128>}, {pipeline_mode = #tpu.pipeline_mode<synchronous>, transform_indices = @transform_4, window_bounds = array<i64: 1, 128>}, {pipeline_mode = #tpu.pipeline_mode<synchronous>, transform_indices = @transform_5, window_bounds = array<i64: 128, 128>}, {pipeline_mode = #tpu.pipeline_mode<synchronous>, transform_indices = @transform_6, window_bounds = array<i64: 1, 128>}, {transform_indices = @transform_7, window_bounds = array<i64: 32, 128>}]} {
    %cst = arith.constant 0.000000e+00 : bf16
    %0 = vector.broadcast %cst : bf16 to vector<32x512xbf16>
    %c0 = arith.constant 0 : index
    %c0_0 = arith.constant 0 : index
    %1 = vector.load %arg9[%c0, %c0_0] : memref<32x512xbf16, #tpu.memory_space<vmem>>, vector<32x512xbf16>
    tpu.vector_store %arg9[%c0, %c0_0], %0 {strides = array<i32>} : memref<32x512xbf16, #tpu.memory_space<vmem>>, vector<32x512xbf16>,
    %c0_1 = arith.constant 0 : index
    %c0_2 = arith.constant 0 : index
    %2 = vector.load %arg1[%c0_1, %c0_2] : memref<32x400xbf16, #tpu.memory_space<vmem>>, vector<32x400xbf16>
    %c0_3 = arith.constant 0 : index
    %c0_4 = arith.constant 0 : index
    %3 = vector.load %arg9[%c0_3, %c0_4] : memref<32x512xbf16, #tpu.memory_space<vmem>>, vector<32x400xbf16>
    tpu.vector_store %arg9[%c0_3, %c0_4], %2 {strides = array<i32>} : memref<32x512xbf16, #tpu.memory_space<vmem>>, vector<32x400xbf16>,
    %c0_5 = arith.constant 0 : index
    %c0_6 = arith.constant 0 : index
    %4 = vector.load %arg9[%c0_5, %c0_6] : memref<32x512xbf16, #tpu.memory_space<vmem>>, vector<32x512xbf16>
    %c0_7 = arith.constant 0 : index
    %c0_8 = arith.constant 0 : index
    %5 = vector.load %arg2[%c0_7, %c0_8] : memref<512x128xbf16, #tpu.memory_space<vmem>>, vector<512x128xbf16>
    %c0_9 = arith.constant 0 : index
    %c0_10 = arith.constant 0 : index
    %6 = vector.load %arg3[%c0_9, %c0_10] : memref<1x128xf32, #tpu.memory_space<vmem>>, vector<1x128xf32>
    %cst_11 = arith.constant dense<0.000000e+00> : vector<32x128xf32>
    %7 = tpu.matmul %4, %5, %cst_11 {dimension_numbers = #tpu.dot_dimension_numbers<[1], [0], [0], [1], [0, 0, 1, 1], [], []>} : vector<32x512xbf16>, vector<512x128xbf16>, vector<32x128xf32> -> vector<32x128xf32>
    %8 = vector.broadcast %6 : vector<1x128xf32> to vector<32x128xf32>
    %9 = arith.addf %7, %8 : vector<32x128xf32>
    %cst_12 = arith.constant 0.000000e+00 : f32
    %10 = vector.broadcast %cst_12 : f32 to vector<32x128xf32>
    %11 = arith.maximumf %9, %10 : vector<32x128xf32>
    %12 = arith.truncf %11 : vector<32x128xf32> to vector<32x128xbf16>
    %c0_13 = arith.constant 0 : index
    %c0_14 = arith.constant 0 : index
    %13 = vector.load %arg4[%c0_13, %c0_14] : memref<128x128xbf16, #tpu.memory_space<vmem>>, vector<128x128xbf16>
    %c0_15 = arith.constant 0 : index
    %c0_16 = arith.constant 0 : index
    %14 = vector.load %arg5[%c0_15, %c0_16] : memref<1x128xf32, #tpu.memory_space<vmem>>, vector<1x128xf32>
    %cst_17 = arith.constant dense<0.000000e+00> : vector<32x128xf32>
    %15 = tpu.matmul %12, %13, %cst_17 {dimension_numbers = #tpu.dot_dimension_numbers<[1], [0], [0], [1], [0, 0, 1, 1], [], []>} : vector<32x128xbf16>, vector<128x128xbf16>, vector<32x128xf32> -> vector<32x128xf32>
    %16 = vector.broadcast %14 : vector<1x128xf32> to vector<32x128xf32>
    %17 = arith.addf %15, %16 : vector<32x128xf32>
    %cst_18 = arith.constant 0.000000e+00 : f32
    %18 = vector.broadcast %cst_18 : f32 to vector<32x128xf32>
    %19 = arith.maximumf %17, %18 : vector<32x128xf32>
    %20 = arith.truncf %19 : vector<32x128xf32> to vector<32x128xbf16>
    %c0_19 = arith.constant 0 : index
    %c0_20 = arith.constant 0 : index
    %21 = vector.load %arg6[%c0_19, %c0_20] : memref<128x128xbf16, #tpu.memory_space<vmem>>, vector<128x128xbf16>
    %cst_21 = arith.constant dense<0.000000e+00> : vector<32x128xf32>
    %22 = tpu.matmul %20, %21, %cst_21 {dimension_numbers = #tpu.dot_dimension_numbers<[1], [0], [0], [1], [0, 0, 1, 1], [], []>} : vector<32x128xbf16>, vector<128x128xbf16>, vector<32x128xf32> -> vector<32x128xf32>
    %c0_22 = arith.constant 0 : index
    %c0_23 = arith.constant 0 : index
    %23 = vector.load %arg7[%c0_22, %c0_23] : memref<1x128xf32, #tpu.memory_space<vmem>>, vector<1x128xf32>
    %24 = vector.broadcast %23 : vector<1x128xf32> to vector<32x128xf32>
    %25 = arith.addf %22, %24 : vector<32x128xf32>
    %26 = arith.truncf %25 : vector<32x128xf32> to vector<32x128xbf16>
    %c0_24 = arith.constant 0 : index
    %c0_25 = arith.constant 0 : index
    %27 = vector.load %arg8[%c0_24, %c0_25] : memref<32x128xbf16, #tpu.memory_space<vmem>>, vector<32x128xbf16>
    tpu.vector_store %arg8[%c0_24, %c0_25], %26 {strides = array<i32>} : memref<32x128xbf16, #tpu.memory_space<vmem>>, vector<32x128xbf16>,
    return
  }
  func.func @transform_0(%arg0: i32) -> (i32, i32) {
    %c0_i32 = arith.constant 0 : i32
    %c0_i32_0 = arith.constant 0 : i32
    return %arg0, %c0_i32 : i32, i32
  }
  func.func @transform_1(%arg0: i32) -> (i32, i32) {
    %c0_i32 = arith.constant 0 : i32
    %c0_i32_0 = arith.constant 0 : i32
    %c0_i32_1 = arith.constant 0 : i32
    return %c0_i32, %c0_i32_0 : i32, i32
  }
  func.func @transform_2(%arg0: i32) -> (i32, i32) {
    %c0_i32 = arith.constant 0 : i32
    %c0_i32_0 = arith.constant 0 : i32
    %c0_i32_1 = arith.constant 0 : i32
    return %c0_i32, %c0_i32_0 : i32, i32
  }
  func.func @transform_3(%arg0: i32) -> (i32, i32) {
    %c0_i32 = arith.constant 0 : i32
    %c0_i32_0 = arith.constant 0 : i32
    %c0_i32_1 = arith.constant 0 : i32
    return %c0_i32, %c0_i32_0 : i32, i32
  }
  func.func @transform_4(%arg0: i32) -> (i32, i32) {
    %c0_i32 = arith.constant 0 : i32
    %c0_i32_0 = arith.constant 0 : i32
    %c0_i32_1 = arith.constant 0 : i32
    return %c0_i32, %c0_i32_0 : i32, i32
  }
  func.func @transform_5(%arg0: i32) -> (i32, i32) {
    %c0_i32 = arith.constant 0 : i32
    %c0_i32_0 = arith.constant 0 : i32
    %c0_i32_1 = arith.constant 0 : i32
    return %c0_i32, %c0_i32_0 : i32, i32
  }
  func.func @transform_6(%arg0: i32) -> (i32, i32) {
    %c0_i32 = arith.constant 0 : i32
    %c0_i32_0 = arith.constant 0 : i32
    %c0_i32_1 = arith.constant 0 : i32
    return %c0_i32, %c0_i32_0 : i32, i32
  }
  func.func @transform_7(%arg0: i32) -> (i32, i32) {
    %c0_i32 = arith.constant 0 : i32
    %c0_i32_0 = arith.constant 0 : i32
    return %arg0, %c0_i32 : i32, i32
  }
}

</mosaic_0001>

<bundles_post_ra>
// kernel: gating_mechanism_forward.3
= control target key start
LH: loop header
LB: loop body
LE: loop exit
PB: predicated region body
PF: predicated region fallthrough
CT: control target
= control target key end

     0   :  { %s1369_s24 = smov 0   ;;  %s1547_s0 = inlined_call_operand.vmem [shape: bf16[64,400], index: 0, kind: input, shape index: {}]   ;;  %s1548_s1 = inlined_call_operand.vmem [shape: bf16[512,128], index: 1, kind: input, shape index: {}]   ;;  %s1549_s2 = inlined_call_operand.vmem [shape: f32[1,128], index: 2, kind: input, shape index: {}]   ;;  %s1550_s3 = inlined_call_operand.vmem [shape: bf16[128,128], index: 3, kind: input, shape index: {}]   ;;  %s1551_s4 = inlined_call_operand.vmem [shape: f32[1,128], index: 4, kind: input, shape index: {}]   ;;  %s1552_s5 = inlined_call_operand.vmem [shape: bf16[128,128], index: 5, kind: input, shape index: {}]   ;;  %s1553_s6 = inlined_call_operand.vmem [shape: f32[1,128], index: 6, kind: input, shape index: {}]   ;;  %s1554_s7 = inlined_call_operand.vmem [shape: bf16[64,128], index: 7, kind: output, shape index: {}]  }
   0x1 LB: > { %s1048_s25 = sadd.s32 4294967295, %s1326_s24   ;;  %p1052_p0 = scmp.ge.s32.totalorder %s1326_s24, 1  ;;  %s1326_s24 = sphi %s1369_s24, %s17_s24  }
   0x2   : > { %p239_p1 = scmp.lt.s32.totalorder %s1326_s24, 3 }
   0x4   : > { %p240_p2 = pnand %p1052_p0, %p239_p1 }
   0x5   : > { %v1264_v0 = vld [vmem:[%s1548_s1 + $0x40] sm:$0xff] (!%p240_p2)   ;;  %v1328_v4 = vmov (!%p240_p2), 0   ;;  %v1268_v5 = vld [vmem:[%s1548_s1 + $0x48] sm:$0xff] (!%p240_p2)   ;;  %v1272_v9 = vld [vmem:[%s1548_s1 + $0x50] sm:$0xff] (!%p240_p2)   ;;  %s1053_s16 = sshll.u32 (!%p240_p2), %s1048_s25, 2  ;;  %vm345_vm0 = vcmask (!%p240_p2), 130048  }
   0x6   : > { %243 = sbr.rel (%p240_p2) target bundleno = 714 (0x2ca), region = 48  ;;  %v1265_v1 = vld [vmem:[%s1548_s1 + $0xc0] sm:$0xff] (!%p240_p2)   ;;  %1139 = vmatprep.subr.bf16.mxu0 (!%p240_p2), %v1264_v0  ;;  %289 = vst [vmem:[#allocation2 + $0x18] sm:$0xff] (!%p240_p2), %v1328_v4  ;;  %293 = vst [vmem:[#allocation2 + $0x38] sm:$0xff] (!%p240_p2), %v1328_v4  ;;  %v1269_v6 = vld [vmem:[%s1548_s1 + $0xc8] sm:$0xff] (!%p240_p2)   ;;  %p273_p3 = scmp.lt.s32.totalorder (!%p240_p2), %s1053_s16, 7 }
   0x7   : > { %v1266_v2 = vld [vmem:[%s1548_s1] sm:$0xff] (!%p240_p2)   ;;  %1167 = vmatprep.subr.bf16.mxu1 (!%p240_p2), %v1265_v1  ;;  %v1270_v7 = vld [vmem:[%s1548_s1 + $0x8] sm:$0xff] (!%p240_p2)   ;;  %v1273_v10 = vld [vmem:[%s1548_s1 + $0xd0] sm:$0xff] (!%p240_p2)  }
   0x8   : > { %v1267_v3 = vld [vmem:[%s1548_s1 + $0x80] sm:$0xff] (!%p240_p2)   ;;  %1140 = vmatpush3.bf16.msra.mxu0 (!%p240_p2), %v1266_v2  ;;  %v1271_v8 = vld [vmem:[%s1548_s1 + $0x88] sm:$0xff] (!%p240_p2)   ;;  %v1274_v11 = vld [vmem:[%s1548_s1 + $0x10] sm:$0xff] (!%p240_p2)  }
   0x9   : > { %1168 = vmatpush3.bf16.msra.mxu1 (!%p240_p2), %v1267_v3  ;;  %1141 = vmatprep.subr.bf16.mxu0 (!%p240_p2), %v1268_v5  ;;  %v1275_v12 = vld [vmem:[%s1548_s1 + $0x90] sm:$0xff] (!%p240_p2)   ;;  %v1276_v13 = vld [vmem:[%s1548_s1 + $0x58] sm:$0xff] (!%p240_p2)   ;;  %v1280_v17 = vld [vmem:[%s1548_s1 + $0x60] sm:$0xff] (!%p240_p2)  }
   0xa   : > { %1169 = vmatprep.subr.bf16.mxu1 (!%p240_p2), %v1269_v6  ;;  %v1277_v14 = vld [vmem:[%s1548_s1 + $0xd8] sm:$0xff] (!%p240_p2)   ;;  %v1281_v18 = vld [vmem:[%s1548_s1 + $0xe0] sm:$0xff] (!%p240_p2)   ;;  %v1284_v21 = vld [vmem:[%s1548_s1 + $0x68] sm:$0xff] (!%p240_p2)  }
   0xb   : > { %v1278_v15 = vld [vmem:[%s1548_s1 + $0x18] sm:$0xff] (!%p240_p2)   ;;  %v1282_v19 = vld [vmem:[%s1548_s1 + $0x20] sm:$0xff] (!%p240_p2)   ;;  %v1285_v22 = vld [vmem:[%s1548_s1 + $0xe8] sm:$0xff] (!%p240_p2)  }
   0xc   : > { %1142 = vmatpush3.bf16.msra.mxu0 (!%p240_p2), %v1270_v7  ;;  %v1279_v16 = vld [vmem:[%s1548_s1 + $0x98] sm:$0xff] (!%p240_p2)   ;;  %v1283_v20 = vld [vmem:[%s1548_s1 + $0xa0] sm:$0xff] (!%p240_p2)   ;;  %v1286_v23 = vld [vmem:[%s1548_s1 + $0x28] sm:$0xff] (!%p240_p2)  }
   0xd   : > { %1170 = vmatpush3.bf16.msra.mxu1 %v1271_v8  ;;  %1143 = vmatprep.subr.bf16.mxu0 %v1272_v9  ;;  %v1287_v24 = vld [vmem:[%s1548_s1 + $0xa8] sm:$0xff]   ;;  %s1556_s16 = smov (!%p273_p3, %s1053_s16), 7  ;;  %v1288_v25 = vld [vmem:[%s1548_s1 + $0x70] sm:$0xff]   ;;  %v1292_v29 = vld [vmem:[%s1548_s1 + $0x78] sm:$0xff]  }
   0xe   : > { %1171 = vmatprep.subr.bf16.mxu1 %v1273_v10  ;;  %v1289_v26 = vld [vmem:[%s1548_s1 + $0xf0] sm:$0xff]   ;;  %s1123_s18 = sshll.u32 %s1556_s16, 4  ;;  %v1293_v30 = vld [vmem:[%s1548_s1 + $0xf8] sm:$0xff]   ;;  %v1304_v49 = vld [vmem:[%s1550_s3] sm:$0xff]   ;;  %s1057_s27 = sshll.u32 %s1556_s16, 2 }
   0xf   : > { %v1290_v27 = vld [vmem:[%s1548_s1 + $0x30] sm:$0xff]   ;;  %v1294_v31 = vld [vmem:[%s1548_s1 + $0x38] sm:$0xff]   ;;  %s277_s28 = scalar_lea.vmem %s1547_s0, %s1123_s18  ;;  %v1305_v50 = vld [vmem:[%s1550_s3 + $0x8] sm:$0xff]   ;;  %s283_s30 = scalar_lea.vmem %s1554_s7, %s1057_s27 }
  0x10   : > { %1144 = vmatpush3.bf16.msra.mxu0 %v1274_v11  ;;  %v1291_v28 = vld [vmem:[%s1548_s1 + $0xb0] sm:$0xff]   ;;  %v1295_v32 = vld [vmem:[%s1548_s1 + $0xb8] sm:$0xff]   ;;  %v294_v33 = vld [vmem:[%s277_s28] sm:$0xff] }
  0x11   : > { %1172 = vmatpush3.bf16.msra.mxu1 %v1275_v12  ;;  %1145 = vmatprep.subr.bf16.mxu0 %v1276_v13  ;;  %v296_v34 = vld [vmem:[%s277_s28 + $0x10] sm:$0xff]  ;;  %v295_v36 = vld [vmem:[%s277_s28 + $0x8] sm:$0xff]  ;;  %v297_v37 = vld [vmem:[%s277_s28 + $0x18] sm:$0xff] }
  0x12   : > { %1173 = vmatprep.subr.bf16.mxu1 %v1277_v14  ;;  %v1296_v35 = vld [vmem:[%s277_s28 + $0x4] ss:$16 sps:$4 sm:$0xff]   ;;  %v1298_v38 = vld [vmem:[%s277_s28 + $0xc] ss:$16 sps:$4 sm:$0xff]   ;;  %v1058_v39 = vcombine.low %v294_v33, %v296_v34  ;;  %v1060_v40 = vcombine.low %v295_v36, %v297_v37  ;;  %v1066_v7 = vld [vmem:[%s1549_s2] ss:$0 sm:$0xff] }
  0x13   : > { %654 = vmatprep.mubr.bf16.mxu0 %v1296_v35  ;;  %v298_v41 = vld [vmem:[%s277_s28 + $0x20] sm:$0xff]  ;;  %v300_v42 = vld [vmem:[%s277_s28 + $0x30] sm:$0xff]  ;;  %346 = vst.msk [vmem:[#allocation2 + $0x18] sm:$0xff] %vm345_vm0, %v1298_v38  ;;  %v299_v44 = vld [vmem:[%s277_s28 + $0x28] sm:$0xff] }
  0x14   : > { %1146 = vmatpush3.bf16.msra.mxu0 %v1278_v15  ;;  %v1300_v43 = vld [vmem:[%s277_s28 + $0x24] ss:$16 sps:$4 sm:$0xff]   ;;  %v301_v45 = vld [vmem:[%s277_s28 + $0x38] sm:$0xff]  ;;  %v1062_v47 = vcombine.low %v298_v41, %v300_v42  ;;  %v1309_v56 = vld [vmem:[%s1550_s3 + $0x28] sm:$0xff]  }
  0x15   : > { %1174 = vmatpush3.bf16.msra.mxu1 %v1279_v16  ;;  %1147 = vmatprep.subr.bf16.mxu0 %v1280_v17  ;;  %v1302_v46 = vld [vmem:[%s277_s28 + $0x2c] ss:$16 sps:$4 sm:$0xff]   ;;  %v1064_v48 = vcombine.low %v299_v44, %v301_v45  ;;  %v1306_v51 = vld [vmem:[%s1550_s3 + $0x10] sm:$0xff]   ;;  %v1308_v55 = vld [vmem:[%s1550_s3 + $0x20] sm:$0xff]  }
  0x16   : > { %1175 = vmatprep.subr.bf16.mxu1 %v1281_v18  ;;  %350 = vst.msk [vmem:[#allocation2 + $0x38] sm:$0xff] %vm345_vm0, %v1302_v46  ;;  %v1307_v54 = vld [vmem:[%s1550_s3 + $0x18] sm:$0xff]   ;;  %v1310_v57 = vld [vmem:[%s1550_s3 + $0x30] sm:$0xff]   ;;  %v1312_v59 = vld [vmem:[%s1552_s5] sm:$0xff]  }
  0x17   : > { %v1311_v58 = vld [vmem:[%s1550_s3 + $0x38] sm:$0xff]   ;;  %v1313_v60 = vld [vmem:[%s1552_s5 + $0x8] sm:$0xff]   ;;  %v1314_v61 = vld [vmem:[%s1552_s5 + $0x10] sm:$0xff]  }
  0x18   : > { %1148 = vmatpush3.bf16.msra.mxu0 %v1282_v19  ;;  %v1315_v62 = vld [vmem:[%s1552_s5 + $0x18] sm:$0xff]   ;;  %v1316_v63 = vld [vmem:[%s1552_s5 + $0x20] sm:$0xff]   ;;  %v1317_v0 = vld [vmem:[%s1552_s5 + $0x28] sm:$0xff]  }
  0x19   : > { %1176 = vmatpush3.bf16.msra.mxu1 %v1283_v20  ;;  %1149 = vmatprep.subr.bf16.mxu0 %v1284_v21  ;;  %v1319_v41 = vld [vmem:[%s1552_s5 + $0x38] sm:$0xff]   ;;  %v1099_v42 = vld [vmem:[%s1551_s4] ss:$0 sm:$0xff] }
  0x1a   : > { %1177 = vmatprep.subr.bf16.mxu1 %v1285_v22  ;;  %v354_v52 = vld [vmem:[#allocation2 + $0x18] sm:$0xff] }
  0x1b   : > { %703 = vmatprep.mubr.bf16.mxu1 %v354_v52 }
  0x1c   : > { %1150 = vmatpush3.bf16.msra.mxu0 %v1286_v23 }
  0x1d   : > { %1178 = vmatpush3.bf16.msra.mxu1 %v1287_v24  ;;  %1151 = vmatprep.subr.bf16.mxu0 %v1288_v25  ;;  %v358_v53 = vld [vmem:[#allocation2 + $0x38] sm:$0xff] }
  0x1e   : > { %1179 = vmatprep.subr.bf16.mxu1 %v1289_v26 }
  0x20   : > { %1152 = vmatpush3.bf16.msra.mxu0 %v1290_v27 }
  0x21   : > { %1180 = vmatpush3.bf16.msra.mxu1 %v1291_v28  ;;  %1153 = vmatprep.subr.bf16.mxu0 %v1292_v29 }
  0x22   : > { %1181 = vmatprep.subr.bf16.mxu1 %v1293_v30 }
  0x24   : > { %1154 = vmatpush3.bf16.msra.mxu0 %v1294_v31 }
  0x25   : > { %1182 = vmatpush3.bf16.msra.mxu1 %v1295_v32  ;;  %1215 = vmatprep.subr.bf16.mxu0 %v1304_v49 }
  0x26   : > { %1235 = vmatprep.subr.bf16.mxu1 %v1312_v59 }
  0x27   : > { %655 = vmatmul.mubr.bf16.vlgmr.msra.gmra.mrb[0].mxu0 %v1058_v39 }
  0x28   : > { %662 = vmatprep.mubr.bf16.mxu0 %v1300_v43  ;;  %1216 = vmatpush3.bf16.msra.mxu0 %v1304_v49 }
  0x29   : > { %1217 = vmatprep.subr.bf16.mxu0 %v1305_v50  ;;  %704 = vmatmul.mubr.bf16.vlgmr.msra.gmra.mrb[0].mxu1 %v1060_v40  ;;  %v1318_v40 = vld [vmem:[%s1552_s5 + $0x30] sm:$0xff]  }
  0x2a   : > { %711 = vmatprep.mubr.bf16.mxu1 %v358_v53  ;;  %1236 = vmatpush3.bf16.msra.mxu1 %v1312_v59 }
  0x2b   : > { %1237 = vmatprep.subr.bf16.mxu1 %v1313_v60 }
  0x2c   : > { %1218 = vmatpush3.bf16.msra.mxu0 %v1305_v50 }
  0x2d   : > { %1219 = vmatprep.subr.bf16.mxu0 %v1306_v51 }
  0x2e   : > { %1238 = vmatpush3.bf16.msra.mxu1 %v1313_v60 }
  0x2f   : > { %663 = vmatmul.mubr.bf16.gmra.mrb[4].mxu0 %v1062_v47  ;;  %1239 = vmatprep.subr.bf16.mxu1 %v1314_v61 }
  0x30   : > { %1220 = vmatpush3.bf16.msra.mxu0 %v1306_v51 }
  0x31   : > { %712 = vmatmul.mubr.bf16.gmra.mrb[4].mxu1 %v1064_v48  ;;  %1221 = vmatprep.subr.bf16.mxu0 %v1307_v54 }
  0x32   : > { %1240 = vmatpush3.bf16.msra.mxu1 %v1314_v61 }
  0x33   : > { %1241 = vmatprep.subr.bf16.mxu1 %v1315_v62 }
  0x34   : > { %1222 = vmatpush3.bf16.msra.mxu0 %v1307_v54 }
  0x35   : > { %1223 = vmatprep.subr.bf16.mxu0 %v1308_v55 }
  0x36   : > { %1242 = vmatpush3.bf16.msra.mxu1 %v1315_v62 }
  0x37   : > { %1243 = vmatprep.subr.bf16.mxu1 %v1316_v63 }
  0x38   : > { %1224 = vmatpush3.bf16.msra.mxu0 %v1308_v55 }
  0x39   : > { %1225 = vmatprep.subr.bf16.mxu0 %v1309_v56 }
  0x3a   : > { %1244 = vmatpush3.bf16.msra.mxu1 %v1316_v63 }
  0x3b   : > { %1245 = vmatprep.subr.bf16.mxu1 %v1317_v0 }
  0x3c   : > { %1226 = vmatpush3.bf16.msra.mxu0 %v1309_v56 }
  0x3d   : > { %1227 = vmatprep.subr.bf16.mxu0 %v1310_v57 }
  0x3e   : > { %1246 = vmatpush3.bf16.msra.mxu1 %v1317_v0 }
  0x3f   : > { %1247 = vmatprep.subr.bf16.mxu1 %v1318_v40 }
  0x40   : > { %1228 = vmatpush3.bf16.msra.mxu0 %v1310_v57 }
  0x41   : > { %1229 = vmatprep.subr.bf16.mxu0 %v1311_v58 }
  0x42   : > { %1248 = vmatpush3.bf16.msra.mxu1 %v1318_v40 }
  0x43   : > { %1249 = vmatprep.subr.bf16.mxu1 %v1319_v41 }
  0x44   : > { %1230 = vmatpush3.bf16.msra.mxu0 %v1311_v58  ;;  %v1108_v58 = vld [vmem:[%s1553_s6] ss:$0 sm:$0xff] }
  0x46   : > { %1250 = vmatpush3.bf16.msra.mxu1 %v1319_v41 }
  0xfa   : > { %v1155_v1 = vpop.f32.mrb[0].mxu0 }
  0xfb   : > { %v1156_v2 = vpop.f32.mrb[1].mxu0 }
  0xfc   : > { %v1157_v3 = vadd.f32 %v1156_v2, %v1155_v1  ;;  %v1158_v4 = vpop.f32.mrb[2].mxu0  ;;  %v1183_v9 = vpop.f32.mrb[0].mxu1 }
  0xfd   : > { %v1159_v5 = vpop.f32.mrb[3].mxu0  ;;  %v1184_v12 = vpop.f32.mrb[1].mxu1 }
  0xfe   : > { %v1160_v6 = vadd.f32 %v1159_v5, %v1158_v4  ;;  %v657_v10 = vadd.f32 %v1157_v3, %v1066_v7  ;;  %v1185_v15 = vadd.f32 %v1184_v12, %v1183_v9  ;;  %v1186_v16 = vpop.f32.mrb[2].mxu1 }
  0xff   : > { %v1187_v19 = vpop.f32.mrb[3].mxu1 }
 0x100   : > { %v660_v17 = vadd.f32 %v1160_v6, %v1066_v7  ;;  %v706_v21 = vadd.f32 %v1185_v15, %v657_v10  ;;  %v1188_v22 = vadd.f32 %v1187_v19, %v1186_v16 }
 0x102   : > { %v1161_v8 = vpop.f32.mrb[4].mxu0  ;;  %v709_v23 = vadd.f32 %v1188_v22, %v660_v17  ;;  %v720_v24 = vmax.f32 %v706_v21, 0.0 }
 0x103   : > { %v1162_v11 = vpop.f32.mrb[5].mxu0 }
 0x104   : > { %v1163_v13 = vadd.f32 %v1162_v11, %v1161_v8  ;;  %v1164_v14 = vpop.f32.mrb[6].mxu0  ;;  %v721_v25 = vmax.f32 %v709_v23, 0.0  ;;  %v1189_v26 = vpop.f32.mrb[4].mxu1 }
 0x105   : > { %v1165_v18 = vpop.f32.mrb[7].mxu0  ;;  %v1190_v28 = vpop.f32.mrb[5].mxu1 }
 0x106   : > { %v1166_v20 = vadd.f32 %v1165_v18, %v1164_v14  ;;  %v665_v27 = vadd.f32 %v1163_v13, %v1066_v7  ;;  %v1191_v29 = vadd.f32 %v1190_v28, %v1189_v26  ;;  %v1192_v30 = vpop.f32.mrb[6].mxu1  ;;  %v724_v32 = vpack.c.bf16 %v721_v25, %v720_v24 }
 0x107   : > { %v1193_v33 = vpop.f32.mrb[7].mxu1 }
 0x108   : > { %v668_v31 = vadd.f32 %v1166_v20, %v1066_v7  ;;  %v714_v34 = vadd.f32 %v1191_v29, %v665_v27  ;;  %v1194_v35 = vadd.f32 %v1193_v33, %v1192_v30  ;;  %1231 = vmatprep.mubr.bf16.mxu0 %v724_v32 }
 0x10a   : > { %v717_v36 = vadd.f32 %v1194_v35, %v668_v31  ;;  %v722_v37 = vmax.f32 %v714_v34, 0.0 }
 0x10c   : > { %v723_v38 = vmax.f32 %v717_v36, 0.0 }
 0x10e   : > { %v725_v39 = vpack.c.bf16 %v723_v38, %v722_v37 }
 0x110   : > { %1232 = vmatmul.mubr.bf16.vlgmr.msra.gmra.mrb[8].mxu0 %v725_v39 }
 0x1e3   : > { %v1233_v43 = vpop.f32.mrb[8].mxu0 }
 0x1e4   : > { %v840_v44 = vadd.f32 %v1233_v43, %v1099_v42  ;;  %v831_v45 = vpop.f32.mrb[9].mxu0 }
 0x1e5   : > { %v832_v46 = vadd.f32 %v1099_v42, %v831_v45  ;;  %v1234_v47 = vpop.f32.mrb[10].mxu0 }
 0x1e6   : > { %v843_v48 = vadd.f32 %v1234_v47, %v1099_v42  ;;  %v834_v49 = vpop.f32.mrb[11].mxu0  ;;  %v848_v51 = vmax.f32 %v840_v44, 0.0 }
 0x1e7   : > { %v835_v50 = vadd.f32 %v1099_v42, %v834_v49  ;;  %v846_v53 = vmax.f32 %v832_v46, 0.0 }
 0x1e8   : > { %v849_v52 = vmax.f32 %v843_v48, 0.0 }
 0x1e9   : > { %v847_v54 = vmax.f32 %v835_v50, 0.0 }
 0x1ea   : > { %v851_v55 = vpack.c.bf16 %v849_v52, %v848_v51 }
 0x1eb   : > { %v850_v56 = vpack.c.bf16 %v847_v54, %v846_v53 }
 0x1ed   : > { %1251 = vmatprep.mubr.bf16.mxu1 %v850_v56 }
 0x1ee   : > { %1252 = vmatmul.mubr.bf16.vlgmr.msra.gmra.mrb[8].mxu1 %v851_v55 }
 0x2c1   : > { %v1253_v57 = vpop.f32.mrb[8].mxu1 }
 0x2c2   : > { %v957_v59 = vpop.f32.mrb[9].mxu1  ;;  %v966_v61 = vadd.f32 %v1253_v57, %v1108_v58 }
 0x2c3   : > { %v1254_v60 = vpop.f32.mrb[10].mxu1  ;;  %v958_v0 = vadd.f32 %v1108_v58, %v957_v59 }
 0x2c4   : > { %v969_v62 = vadd.f32 %v1254_v60, %v1108_v58  ;;  %v960_v63 = vpop.f32.mrb[11].mxu1 }
 0x2c5   : > { %v961_v1 = vadd.f32 %v1108_v58, %v960_v63 }
 0x2c6   : > { %v1136_v2 = vpack.c.bf16 %v969_v62, %v966_v61 }
 0x2c7   : > { %v1131_v3 = vpack.c.bf16 %v961_v1, %v958_v0 }
 0x2c8   : > { %1138 = vst [vmem:[%s283_s30 + $0x8] sm:$0xff] %v1136_v2  }
 0x2c9   : > { %1132 = vst [vmem:[%s283_s30] sm:$0xff] %v1131_v3  }
 0x2ca PF: > { %s17_s24 = sadd.s32 1, %s1326_s24  }
 0x2cb   : > { %p14_p4 = scmp.ge.s32.totalorder %s17_s24, 4  }
 0x2cd   :  { %16 = sbr.rel (!%p14_p4) target bundleno = 1 (0x1), region = 78 }

// kernel: gating_mechanism_forward.2
= control target key start
LH: loop header
LB: loop body
LE: loop exit
PB: predicated region body
PF: predicated region fallthrough
CT: control target
= control target key end

     0   :  { %15 = vsyncpa [#allocation3], 0  ;;  %s1627_s0 = inlined_call_operand.vmem [shape: f32[8,896], index: 0, kind: input, shape index: {}]   ;;  %s1628_s1 = inlined_call_operand.vmem [shape: f32[8,896], index: 1, kind: input, shape index: {}]   ;;  %s1629_s2 = inlined_call_operand.vmem [shape: f32[1,896], index: 2, kind: input, shape index: {}]   ;;  %s1630_s3 = inlined_call_operand.vmem [shape: f32[1,896], index: 3, kind: input, shape index: {}]   ;;  %s1631_s4 = inlined_call_operand.hbm [shape: bf16[896,128], index: 4, kind: input, shape index: {}]   ;;  %s1632_s5 = inlined_call_operand.vmem [shape: f32[1,128], index: 5, kind: input, shape index: {}]   ;;  %s1633_s6 = inlined_call_operand.vmem [shape: bf16[128,128], index: 6, kind: input, shape index: {}]   ;;  %s1634_s7 = inlined_call_operand.vmem [shape: f32[1,128], index: 7, kind: input, shape index: {}]   ;;  %s1635_s8 = inlined_call_operand.vmem [shape: bf16[128,128], index: 8, kind: input, shape index: {}]   ;;  %s1636_s9 = inlined_call_operand.hbm [shape: f32[1,128], index: 9, kind: input, shape index: {}]   ;;  %s1637_s10 = inlined_call_operand.vmem [shape: f32[8,128], index: 10, kind: output, shape index: {}]  }
   0x1   :  { %16 = vsyncpa [#allocation5], 0  ;;  %s1380_s13 = smov [#allocation2]   ;;  %s1332_s17 = scalar_lea.hbm %s1631_s4, 7168 }
   0x2   :  { %s30_s14 = sshll.u32 %s1380_s13, 4  ;;  %p1333_p0 = scmp.ne.s32.totalorder %s1631_s4, %s1332_s17  ;;  %s31_s14 = int_to_ptr.vmem [resolvable:$true] %s30_s14 }
   0x3   :  { %p1336_p1 = scmp.lt.u32.totalorder %s1332_s17, %s1631_s4 }
   0x5   :  { %p1338_p2 = pnand %p1336_p1, %p1333_p0 }
   0x7   :  { %1341 = shalt.err (!%p1338_p2)
}
   0x8   :  { %s1342_s22 = scalar_lea.vmem %s31_s14, 7168  ;;  %p1347_p4 = scmp.lt.s32.totalorder %s31_s14, %s31_s14 }
   0x9   :  { %p1343_p3 = scmp.ne.s32.totalorder %s31_s14, %s1342_s22  ;;  %p1348_p5 = scmp.lt.s32.totalorder %s1342_s22, %s1342_s22 }
   0xb   :  { %p1349_p6 = por %p1348_p5, %p1347_p4 }
   0xd   :  { %p1350_p7 = pnand %p1349_p6, %p1343_p3 }
   0xf   :  { %1353 = shalt.err (!%p1350_p7)
}
  0x10   :  { %s1381_s23 = smov 64   ;;  %s1382_s24 = smov 4  }
  0x11   :  { %36 = dma.hbm_to_vmem [thread:$0]  %s1631_s4, 7168, %s31_s14, [#allocation3], %s1381_s23, %s1381_s23, %s1382_s24  }
  0x12   :  { %s1383_s27 = smov [#allocation4]   ;;  %s1354_s11 = scalar_lea.hbm %s1636_s9, 16 }
  0x13   :  { %s51_s28 = sshll.u32 %s1383_s27, 4  ;;  %p1355_p8 = scmp.ne.s32.totalorder %s1636_s9, %s1354_s11  ;;  %s52_s28 = int_to_ptr.vmem [resolvable:$true] %s51_s28 }
  0x14   :  { %p1358_p9 = scmp.lt.u32.totalorder %s1354_s11, %s1636_s9 }
  0x16   :  { %p1360_p10 = pnand %p1358_p9, %p1355_p8 }
  0x18   :  { %1363 = shalt.err (!%p1360_p10)
}
  0x19   :  { %s1364_s17 = scalar_lea.vmem %s52_s28, 16  ;;  %s1368_s4 = scalar_lea.vmem %s52_s28, 32 }
  0x1a   :  { %p1365_p11 = scmp.ne.s32.totalorder %s52_s28, %s1364_s17  ;;  %p1369_p12 = scmp.lt.s32.totalorder %s52_s28, %s52_s28 }
  0x1b   :  { %p1370_p13 = scmp.lt.s32.totalorder %s1368_s4, %s1364_s17 }
  0x1d   :  { %p1371_p0 = por %p1370_p13, %p1369_p12 }
  0x1f   :  { %p1372_p1 = pnand %p1371_p0, %p1365_p11 }
  0x21   :  { %1375 = shalt.err (!%p1372_p1)
}
  0x22   :  { %54 = dma.hbm_to_vmem [thread:$0]  %s1636_s9, 16, %s52_s28, [#allocation5]  }
  0x23   :  { %1376 = dma.done.wait [#allocation3], 7168  }
  0x24   :  { %1377 = vsyncadd [#allocation3], 4294960128 }
  0x25   :  { %1378 = dma.done.wait [#allocation5], 16  }
  0x26   :  { %1379 = vsyncadd [#allocation5], 4294967280  ;;  %v1260_v0 = vld [vmem:[#allocation2 + $0x40] sm:$0xff]   ;;  %v1264_v4 = vld [vmem:[#allocation2 + $0x48] sm:$0xff]   ;;  %v71_v19 = vlaneseq  ;;  %vm1385_vm0 = vmmov 0  }
  0x27   :  { %v1261_v1 = vld [vmem:[#allocation2] sm:$0xff]   ;;  %1101 = vmatprep.subr.bf16.mxu0 %v1260_v0  ;;  %v1265_v5 = vld [vmem:[#allocation2 + $0x8] sm:$0xff]   ;;  %v1268_v8 = vld [vmem:[#allocation2 + $0x50] sm:$0xff]  }
  0x28   :  { %v1262_v2 = vld [vmem:[#allocation2 + $0xc0] sm:$0xff]   ;;  %1102 = vmatpush3.bf16.msra.mxu0 %v1261_v1  ;;  %v1266_v6 = vld [vmem:[#allocation2 + $0xc8] sm:$0xff]   ;;  %v1269_v9 = vld [vmem:[#allocation2 + $0x10] sm:$0xff]   ;;  %v1465_v24 = vshrl.u32 %v71_v19, 7 }
  0x29   :  { %v1263_v3 = vld [vmem:[#allocation2 + $0x80] sm:$0xff]   ;;  %1123 = vmatprep.subr.bf16.mxu1 %v1262_v2  ;;  %1103 = vmatprep.subr.bf16.mxu0 %v1264_v4  ;;  %v1267_v7 = vld [vmem:[#allocation2 + $0x88] sm:$0xff]   ;;  %v1270_v10 = vld [vmem:[#allocation2 + $0xd0] sm:$0xff]   ;;  %v1384_v2 = vmov 0.0  }
  0x2a   :  { %1124 = vmatpush3.bf16.msra.mxu1 %v1263_v3  ;;  %v1271_v11 = vld [vmem:[#allocation2 + $0x90] sm:$0xff]   ;;  %v1272_v12 = vld [vmem:[#allocation2 + $0x58] sm:$0xff]   ;;  %v1276_v16 = vld [vmem:[#allocation2 + $0x60] sm:$0xff]   ;;  %v77_v29 = vsub.s32 1, %v1465_v24  ;;  %v73_v31 = vsub.s32 0, %v1465_v24  ;;  %v85_v33 = vsub.s32 3, %v1465_v24 }
  0x2b   :  { %1125 = vmatprep.subr.bf16.mxu1 %v1266_v6  ;;  %v1273_v13 = vld [vmem:[#allocation2 + $0x18] sm:$0xff]   ;;  %v1277_v17 = vld [vmem:[#allocation2 + $0x20] sm:$0xff]   ;;  %v1280_v21 = vld [vmem:[#allocation2 + $0x68] sm:$0xff]   ;;  %v81_v35 = vsub.s32 2, %v1465_v24 }
  0x2c   :  { %1104 = vmatpush3.bf16.msra.mxu0 %v1265_v5  ;;  %v1274_v14 = vld [vmem:[#allocation2 + $0xd8] sm:$0xff]   ;;  %v1278_v18 = vld [vmem:[#allocation2 + $0xe0] sm:$0xff]   ;;  %v1281_v22 = vld [vmem:[#allocation2 + $0x28] sm:$0xff]  }
  0x2d   :  { %1105 = vmatprep.subr.bf16.mxu0 %v1268_v8  ;;  %v1275_v15 = vld [vmem:[#allocation2 + $0x98] sm:$0xff]   ;;  %v1279_v20 = vld [vmem:[#allocation2 + $0xa0] sm:$0xff]   ;;  %v1282_v23 = vld [vmem:[#allocation2 + $0xe8] sm:$0xff]  }
  0x2e   :  { %1126 = vmatpush3.bf16.msra.mxu1 %v1267_v7  ;;  %v1283_v25 = vld [vmem:[#allocation2 + $0xa8] sm:$0xff]   ;;  %v1284_v26 = vld [vmem:[#allocation2 + $0x70] sm:$0xff]   ;;  %v1288_v32 = vld [vmem:[#allocation2 + $0x78] sm:$0xff]  }
  0x2f   :  { %1127 = vmatprep.subr.bf16.mxu1 %v1270_v10  ;;  %v1285_v27 = vld [vmem:[#allocation2 + $0x30] sm:$0xff]   ;;  %v1289_v34 = vld [vmem:[#allocation2 + $0x38] sm:$0xff]   ;;  %v1474_v37 = vld [vmem:[%s1629_s2] sm:$0xff] }
  0x30   :  { %1106 = vmatpush3.bf16.msra.mxu0 %v1269_v9  ;;  %v1286_v28 = vld [vmem:[#allocation2 + $0xf0] sm:$0xff]   ;;  %v1290_v36 = vld [vmem:[#allocation2 + $0xf8] sm:$0xff]   ;;  %v64_v38 = vld [vmem:[%s1627_s0 + $0x8] sm:$0xff]  ;;  %v78_v40 = vrot.slane %v1474_v37, %v77_v29  ;;  %v74_v43 = vrot.slane %v1474_v37, %v73_v31  ;;  %v86_v48 = vrot.slane %v1474_v37, %v85_v33  ;;  %v82_v50 = vrot.slane %v1474_v37, %v81_v35 }
  0x31   :  { %1107 = vmatprep.subr.bf16.mxu0 %v1272_v12  ;;  %v1287_v30 = vld [vmem:[#allocation2 + $0xb0] sm:$0xff]   ;;  %v1482_v39 = vld [vmem:[%s1630_s3] sm:$0xff]  ;;  %v115_v41 = vld [vmem:[%s1628_s1 + $0x8] sm:$0xff] }
  0x32   :  { %1128 = vmatpush3.bf16.msra.mxu1 %v1271_v11  ;;  %v129_v42 = vrot.slane %v1482_v39, %v77_v29  ;;  %v125_v44 = vrot.slane %v1482_v39, %v73_v31  ;;  %v1291_v45 = vld [vmem:[#allocation2 + $0xb8] sm:$0xff]   ;;  %v63_v46 = vld [vmem:[%s1627_s0] sm:$0xff]  ;;  %v137_v49 = vrot.slane %v1482_v39, %v85_v33  ;;  %v133_v51 = vrot.slane %v1482_v39, %v81_v35  ;;  %v65_v63 = vld [vmem:[%s1627_s0 + $0x10] sm:$0xff] }
  0x33   :  { %1129 = vmatprep.subr.bf16.mxu1 %v1274_v14  ;;  %v114_v47 = vld [vmem:[%s1628_s1] sm:$0xff]  ;;  %v107_v52 = vmul.f32 %v78_v40, %v64_v38  ;;  %v106_v54 = vmul.f32 %v74_v43, %v63_v46  ;;  %v66_v57 = vld [vmem:[%s1627_s0 + $0x18] sm:$0xff]  ;;  %v108_v0 = vmul.f32 %v82_v50, %v65_v63  ;;  %v116_v1 = vld [vmem:[%s1628_s1 + $0x10] sm:$0xff]  ;;  %v97_v29 = vsub.s32 6, %v1465_v24 }
  0x34   :  { %1108 = vmatpush3.bf16.msra.mxu0 %v1273_v13  ;;  %v158_v53 = vmul.f32 %v129_v42, %v115_v41  ;;  %v157_v55 = vmul.f32 %v125_v44, %v114_v47  ;;  %v1292_v56 = vld [vmem:[#allocation2 + $0x140] sm:$0xff]   ;;  %v117_v58 = vld [vmem:[%s1628_s1 + $0x18] sm:$0xff]  ;;  %v109_v61 = vmul.f32 %v86_v48, %v66_v57  ;;  %v159_v7 = vmul.f32 %v133_v51, %v116_v1  ;;  %v1295_v8 = vld [vmem:[#allocation2 + $0x148] sm:$0xff]  }
  0x35   :  { %1109 = vmatprep.subr.bf16.mxu0 %v1276_v16  ;;  %v160_v62 = vmul.f32 %v137_v49, %v117_v58  ;;  %v1293_v6 = vld [vmem:[#allocation2 + $0x100] sm:$0xff]   ;;  %v1296_v13 = vld [vmem:[#allocation2 + $0x108] sm:$0xff]   ;;  %v1298_v14 = vld [vmem:[#allocation2 + $0x150] sm:$0xff]   ;;  %v149_v46 = vrot.slane %v1482_v39, %v97_v29 }
  0x36   :  { %1130 = vmatpush3.bf16.msra.mxu1 %v1275_v15  ;;  %v165_v59 = vadd.f32 %v158_v53, %v107_v52  ;;  %v164_v60 = vadd.f32 %v157_v55, %v106_v54  ;;  %v166_v10 = vadd.f32 %v159_v7, %v108_v0  ;;  %v1294_v11 = vld [vmem:[#allocation2 + $0x180] sm:$0xff]   ;;  %v1297_v15 = vld [vmem:[#allocation2 + $0x188] sm:$0xff]   ;;  %v1299_v16 = vld [vmem:[#allocation2 + $0x110] sm:$0xff]  }
  0x37   :  { %1131 = vmatprep.subr.bf16.mxu1 %v1278_v18  ;;  %v167_v5 = vadd.f32 %v160_v62, %v109_v61  ;;  %v1300_v18 = vld [vmem:[#allocation2 + $0x190] sm:$0xff]   ;;  %v1302_v19 = vld [vmem:[#allocation2 + $0x118] sm:$0xff]   ;;  %v1308_v33 = vld [vmem:[#allocation2 + $0x128] sm:$0xff]  }
  0x38   :  { %1110 = vmatpush3.bf16.msra.mxu0 %v1277_v17  ;;  %v172_v3 = vpack.c.bf16 %v165_v59, %v165_v59  ;;  %v171_v4 = vpack.c.bf16 %v164_v60, %v164_v60  ;;  %v173_v12 = vpack.c.bf16 %v166_v10, %v166_v10  ;;  %v1301_v17 = vld [vmem:[#allocation2 + $0x158] sm:$0xff]   ;;  %v119_v35 = vld [vmem:[%s1628_s1 + $0x28] sm:$0xff]  ;;  %v1311_v41 = vld [vmem:[#allocation2 + $0x130] sm:$0xff]  }
  0x39   :  { %1111 = vmatprep.subr.bf16.mxu0 %v1280_v21  ;;  %v174_v9 = vpack.c.bf16 %v167_v5, %v167_v5  ;;  %v93_v21 = vsub.s32 5, %v1465_v24  ;;  %v67_v42 = vld [vmem:[%s1627_s0 + $0x20] sm:$0xff]  ;;  %v69_v44 = vld [vmem:[%s1627_s0 + $0x30] sm:$0xff]  ;;  %v1313_v47 = vld [vmem:[#allocation2 + $0x178] sm:$0xff]  }
  0x3a   :  { %1132 = vmatpush3.bf16.msra.mxu1 %v1279_v20  ;;  %665 = vmatprep.mubr.bf16.mxu0 %v172_v3  ;;  %v1304_v20 = vld [vmem:[#allocation2 + $0x160] sm:$0xff]   ;;  %v120_v51 = vld [vmem:[%s1628_s1 + $0x30] sm:$0xff]  ;;  %v1314_v54 = vld [vmem:[#allocation2 + $0x138] sm:$0xff]  }
  0x3b   :  { %1133 = vmatprep.subr.bf16.mxu1 %v1282_v23  ;;  %705 = vmatprep.mubr.bf16.mxu1 %v174_v9  ;;  %v89_v23 = vsub.s32 4, %v1465_v24  ;;  %v1309_v24 = vld [vmem:[#allocation2 + $0x1a8] sm:$0xff]   ;;  %v118_v43 = vld [vmem:[%s1628_s1 + $0x20] sm:$0xff]  ;;  %v1312_v52 = vld [vmem:[#allocation2 + $0x1b0] sm:$0xff]  }
  0x3c   :  { %1112 = vmatpush3.bf16.msra.mxu0 %v1281_v22  ;;  %v1303_v22 = vld [vmem:[#allocation2 + $0x198] sm:$0xff]   ;;  %v1316_v60 = vld [vmem:[%s1633_s6] sm:$0xff]   ;;  %v1317_v61 = vld [vmem:[%s1633_s6 + $0x8] sm:$0xff]  }
  0x3d   :  { %1113 = vmatprep.subr.bf16.mxu0 %v1284_v26  ;;  %v1307_v26 = vld [vmem:[#allocation2 + $0x168] sm:$0xff]   ;;  %v90_v31 = vrot.slane %v1474_v37, %v89_v23  ;;  %v1318_v62 = vld [vmem:[%s1633_s6 + $0x10] sm:$0xff]   ;;  %v1319_v63 = vld [vmem:[%s1633_s6 + $0x18] sm:$0xff]  }
  0x3e   :  { %1134 = vmatpush3.bf16.msra.mxu1 %v1283_v25  ;;  %v1305_v25 = vld [vmem:[#allocation2 + $0x120] sm:$0xff]   ;;  %v1321_v1 = vld [vmem:[%s1633_s6 + $0x28] sm:$0xff]   ;;  %v1322_v3 = vld [vmem:[%s1633_s6 + $0x30] sm:$0xff]  }
  0x3f   :  { %1135 = vmatprep.subr.bf16.mxu1 %v1286_v28  ;;  %v145_v28 = vrot.slane %v1482_v39, %v93_v21  ;;  %v110_v49 = vmul.f32 %v90_v31, %v67_v42  ;;  %v1320_v0 = vld [vmem:[%s1633_s6 + $0x20] sm:$0xff]   ;;  %v1326_v7 = vld [vmem:[%s1635_s8 + $0x10] sm:$0xff]   ;;  %v1329_v10 = vld [vmem:[%s1635_s8 + $0x28] sm:$0xff]  }
  0x40   :  { %1114 = vmatpush3.bf16.msra.mxu0 %v1285_v27  ;;  %v94_v27 = vrot.slane %v1474_v37, %v93_v21  ;;  %v1324_v5 = vld [vmem:[%s1635_s8] sm:$0xff]  }
  0x41   :  { %1115 = vmatprep.subr.bf16.mxu0 %v1288_v32  ;;  %v141_v32 = vrot.slane %v1482_v39, %v89_v23  ;;  %v162_v40 = vmul.f32 %v145_v28, %v119_v35  ;;  %v1328_v9 = vld [vmem:[%s1635_s8 + $0x20] sm:$0xff]  }
  0x42   :  { %1136 = vmatpush3.bf16.msra.mxu1 %v1287_v30  ;;  %v1306_v30 = vld [vmem:[#allocation2 + $0x1a0] sm:$0xff]  }
  0x43   :  { %1137 = vmatprep.subr.bf16.mxu1 %v1290_v36  ;;  %v1310_v36 = vld [vmem:[#allocation2 + $0x170] sm:$0xff]   ;;  %v161_v50 = vmul.f32 %v141_v32, %v118_v43 }
  0x44   :  { %1116 = vmatpush3.bf16.msra.mxu0 %v1289_v34  ;;  %v68_v34 = vld [vmem:[%s1627_s0 + $0x28] sm:$0xff] }
  0x45   :  { %1145 = vmatprep.subr.bf16.mxu0 %v1292_v56  ;;  %v111_v38 = vmul.f32 %v94_v27, %v68_v34  ;;  %v168_v39 = vadd.f32 %v161_v50, %v110_v49  ;;  %v1315_v56 = vld [vmem:[#allocation2 + $0x1b8] sm:$0xff]   ;;  %v1092_v49 = vld [vmem:[#allocation4] ss:$0 sm:$0xff] }
  0x46   :  { %1138 = vmatpush3.bf16.msra.mxu1 %v1291_v45  ;;  %v98_v45 = vrot.slane %v1474_v37, %v97_v29  ;;  %v163_v37 = vmul.f32 %v149_v46, %v120_v51 }
  0x47   :  { %1194 = vmatprep.subr.bf16.mxu1 %v1384_v2  ;;  %666 = vmatmul.mubr.bf16.vlgmr.msra.gmra.mrb[0].mxu0 %v171_v4  ;;  %v169_v48 = vadd.f32 %v162_v40, %v111_v38  ;;  %v175_v58 = vpack.c.bf16 %v168_v39, %v168_v39  ;;  %v1323_v4 = vld [vmem:[%s1633_s6 + $0x38] sm:$0xff]   ;;  %v1330_v38 = vld [vmem:[%s1635_s8 + $0x30] sm:$0xff]  }
  0x48   :  { %1146 = vmatpush3.bf16.msra.mxu0 %v1293_v6  ;;  %v112_v55 = vmul.f32 %v98_v45, %v69_v44  ;;  %v1325_v6 = vld [vmem:[%s1635_s8 + $0x8] sm:$0xff]   ;;  %v1331_v40 = vld [vmem:[%s1635_s8 + $0x38] sm:$0xff]  }
  0x49   :  { %1147 = vmatprep.subr.bf16.mxu0 %v1295_v8  ;;  %706 = vmatmul.mubr.bf16.vlgmr.msra.gmra.mrb[0].mxu1 %v173_v12  ;;  %v176_v53 = vpack.c.bf16 %v169_v48, %v169_v48  ;;  %v1327_v8 = vld [vmem:[%s1635_s8 + $0x18] sm:$0xff]   ;;  %v1026_v12 = vld [vmem:[%s1632_s5] ss:$0 sm:$0xff] }
  0x4a   :  { %1195 = vmatpush3.bf16.msra.mxu1 %v1294_v11  ;;  %1210 = vmatprep.mubr.msk.bf16.mxu1 %vm1385_vm0, %v1384_v2  ;;  %v170_v57 = vadd.f32 %v163_v37, %v112_v55 }
  0x4b   :  { %1196 = vmatprep.subr.bf16.mxu1 %v1384_v2  ;;  %745 = vmatprep.mubr.bf16.mxu0 %v176_v53 }
  0x4c   :  { %1148 = vmatpush3.bf16.msra.mxu0 %v1296_v13  ;;  %v177_v59 = vpack.c.bf16 %v170_v57, %v170_v57 }
  0x4d   :  { %1149 = vmatprep.subr.bf16.mxu0 %v1298_v14 }
  0x4e   :  { %1197 = vmatpush3.bf16.msra.mxu1 %v1297_v15 }
  0x4f   :  { %1198 = vmatprep.subr.bf16.mxu1 %v1384_v2 }
  0x50   :  { %1150 = vmatpush3.bf16.msra.mxu0 %v1299_v16 }
  0x51   :  { %1151 = vmatprep.subr.bf16.mxu0 %v1301_v17 }
  0x52   :  { %1199 = vmatpush3.bf16.msra.mxu1 %v1300_v18 }
  0x53   :  { %1200 = vmatprep.subr.bf16.mxu1 %v1384_v2 }
  0x54   :  { %1152 = vmatpush3.bf16.msra.mxu0 %v1302_v19 }
  0x55   :  { %1153 = vmatprep.subr.bf16.mxu0 %v1304_v20 }
  0x56   :  { %1201 = vmatpush3.bf16.msra.mxu1 %v1303_v22 }
  0x57   :  { %1202 = vmatprep.subr.bf16.mxu1 %v1384_v2 }
  0x58   :  { %1154 = vmatpush3.bf16.msra.mxu0 %v1305_v25 }
  0x59   :  { %1155 = vmatprep.subr.bf16.mxu0 %v1307_v26 }
  0x5a   :  { %1203 = vmatpush3.bf16.msra.mxu1 %v1306_v30 }
  0x5b   :  { %1204 = vmatprep.subr.bf16.mxu1 %v1384_v2 }
  0x5c   :  { %1156 = vmatpush3.bf16.msra.mxu0 %v1308_v33 }
  0x5d   :  { %1157 = vmatprep.subr.bf16.mxu0 %v1310_v36 }
  0x5e   :  { %1205 = vmatpush3.bf16.msra.mxu1 %v1309_v24 }
  0x5f   :  { %1206 = vmatprep.subr.bf16.mxu1 %v1384_v2 }
  0x60   :  { %1158 = vmatpush3.bf16.msra.mxu0 %v1311_v41  ;;  %v1083_v41 = vld [vmem:[%s1634_s7] ss:$0 sm:$0xff] }
  0x61   :  { %1159 = vmatprep.subr.bf16.mxu0 %v1313_v47 }
  0x62   :  { %1207 = vmatpush3.bf16.msra.mxu1 %v1312_v52 }
  0x63   :  { %1208 = vmatprep.subr.bf16.mxu1 %v1384_v2 }
  0x64   :  { %1160 = vmatpush3.bf16.msra.mxu0 %v1314_v54 }
  0x65   :  { %1214 = vmatprep.subr.bf16.mxu0 %v1384_v2 }
  0x66   :  { %1209 = vmatpush3.bf16.msra.mxu1 %v1315_v56 }
  0x67   :  { %746 = vmatmul.mubr.bf16.vlgmr.msra.gmra.mrb[4].mxu0 %v175_v58  ;;  %1234 = vmatprep.subr.bf16.mxu1 %v1384_v2 }
  0x68   :  { %1230 = vmatprep.mubr.msk.bf16.mxu0 %vm1385_vm0, %v1384_v2  ;;  %1215 = vmatpush3.bf16.msra.mxu0 %v1316_v60 }
  0x69   :  { %1211 = vmatmul.mubr.bf16.vlgmr.msra.gmra.mrb[4].mxu1 %v177_v59  ;;  %1216 = vmatprep.subr.bf16.mxu0 %v1384_v2 }
  0x6a   :  { %1250 = vmatprep.mubr.msk.bf16.mxu1 %vm1385_vm0, %v1384_v2  ;;  %1235 = vmatpush3.bf16.msra.mxu1 %v1324_v5 }
  0x6b   :  { %1236 = vmatprep.subr.bf16.mxu1 %v1384_v2 }
  0x6c   :  { %1217 = vmatpush3.bf16.msra.mxu0 %v1317_v61 }
  0x6d   :  { %1218 = vmatprep.subr.bf16.mxu0 %v1384_v2 }
  0x6e   :  { %1237 = vmatpush3.bf16.msra.mxu1 %v1325_v6 }
  0x6f   :  { %1238 = vmatprep.subr.bf16.mxu1 %v1384_v2 }
  0x70   :  { %1219 = vmatpush3.bf16.msra.mxu0 %v1318_v62 }
  0x71   :  { %1220 = vmatprep.subr.bf16.mxu0 %v1384_v2 }
  0x72   :  { %1239 = vmatpush3.bf16.msra.mxu1 %v1326_v7 }
  0x73   :  { %1240 = vmatprep.subr.bf16.mxu1 %v1384_v2 }
  0x74   :  { %1221 = vmatpush3.bf16.msra.mxu0 %v1319_v63 }
  0x75   :  { %1222 = vmatprep.subr.bf16.mxu0 %v1384_v2 }
  0x76   :  { %1241 = vmatpush3.bf16.msra.mxu1 %v1327_v8 }
  0x77   :  { %1242 = vmatprep.subr.bf16.mxu1 %v1384_v2 }
  0x78   :  { %1223 = vmatpush3.bf16.msra.mxu0 %v1320_v0 }
  0x79   :  { %1224 = vmatprep.subr.bf16.mxu0 %v1384_v2 }
  0x7a   :  { %1243 = vmatpush3.bf16.msra.mxu1 %v1328_v9 }
  0x7b   :  { %1244 = vmatprep.subr.bf16.mxu1 %v1384_v2 }
  0x7c   :  { %1225 = vmatpush3.bf16.msra.mxu0 %v1321_v1 }
  0x7d   :  { %1226 = vmatprep.subr.bf16.mxu0 %v1384_v2 }
  0x7e   :  { %1245 = vmatpush3.bf16.msra.mxu1 %v1329_v10 }
  0x7f   :  { %1246 = vmatprep.subr.bf16.mxu1 %v1384_v2 }
  0x80   :  { %1227 = vmatpush3.bf16.msra.mxu0 %v1322_v3 }
  0x81   :  { %1228 = vmatprep.subr.bf16.mxu0 %v1384_v2 }
  0x82   :  { %1247 = vmatpush3.bf16.msra.mxu1 %v1330_v38 }
  0x83   :  { %1248 = vmatprep.subr.bf16.mxu1 %v1384_v2 }
  0x84   :  { %1229 = vmatpush3.bf16.msra.mxu0 %v1323_v4 }
  0x86   :  { %1249 = vmatpush3.bf16.msra.mxu1 %v1331_v40 }
 0x11a   :  { %v1117_v11 = vpop.f32.mrb[0].mxu0 }
 0x11b   :  { %v1118_v13 = vpop.f32.mrb[1].mxu0 }
 0x11c   :  { %v1119_v14 = vadd.f32 %v1118_v13, %v1117_v11  ;;  %v1120_v15 = vpop.f32.mrb[2].mxu0  ;;  %v1139_v16 = vpop.f32.mrb[0].mxu1 }
 0x11d   :  { %v1121_v17 = vpop.f32.mrb[3].mxu0  ;;  %v1140_v19 = vpop.f32.mrb[1].mxu1 }
 0x11e   :  { %v668_v18 = vadd.f32 %v1119_v14, %v1026_v12  ;;  %v1141_v20 = vadd.f32 %v1140_v19, %v1139_v16  ;;  %v1142_v21 = vpop.f32.mrb[2].mxu1 }
 0x11f   :  { %v1143_v22 = vpop.f32.mrb[3].mxu1 }
 0x120   :  { %v708_v23 = vadd.f32 %v1141_v20, %v668_v18 }
 0x13a   :  { %v1161_v25 = vpop.f32.mrb[4].mxu0 }
 0x13b   :  { %v1162_v26 = vpop.f32.mrb[5].mxu0 }
 0x13c   :  { %v1163_v27 = vadd.f32 %v1162_v26, %v1161_v25  ;;  %v1164_v28 = vpop.f32.mrb[6].mxu0  ;;  %v787_v29 = vpop.f32.mrb[4].mxu1 }
 0x13d   :  { %v1165_v30 = vpop.f32.mrb[7].mxu0  ;;  %v1212_v32 = vpop.f32.mrb[5].mxu1 }
 0x13e   :  { %v748_v31 = vadd.f32 %v1163_v27, %v708_v23  ;;  %v790_v33 = vpop.f32.mrb[6].mxu1 }
 0x13f   :  { %v1213_v35 = vpop.f32.mrb[7].mxu1 }
 0x140   :  { %v788_v34 = vadd.f32 %v787_v29, %v748_v31 }
 0x142   :  { %v793_v24 = vmax.f32 %v788_v34, 0.0 }
 0x144   :  { %v794_v36 = vpack.c.bf16 %v793_v24, %v793_v24 }
 0x146   :  { %1231 = vmatmul.mubr.bf16.vlgmr.msra.gmra.mrb[8].mxu0 %v794_v36 }
 0x219   :  { %v900_v42 = vpop.f32.mrb[8].mxu0 }
 0x21a   :  { %v901_v43 = vadd.f32 %v1083_v41, %v900_v42  ;;  %v1232_v44 = vpop.f32.mrb[9].mxu0 }
 0x21b   :  { %v903_v45 = vpop.f32.mrb[10].mxu0 }
 0x21c   :  { %v906_v46 = vmax.f32 %v901_v43, 0.0  ;;  %v1233_v47 = vpop.f32.mrb[11].mxu0 }
 0x21e   :  { %v907_v48 = vpack.c.bf16 %v906_v46, %v906_v46 }
 0x220   :  { %1251 = vmatmul.mubr.bf16.vlgmr.msra.gmra.mrb[8].mxu1 %v907_v48 }
 0x2f3   :  { %v1013_v50 = vpop.f32.mrb[8].mxu1 }
 0x2f4   :  { %v1014_v2 = vadd.f32 %v1092_v49, %v1013_v50  ;;  %v1252_v51 = vpop.f32.mrb[9].mxu1 }
 0x2f5   :  { %v1016_v52 = vpop.f32.mrb[10].mxu1 }
 0x2f6   :  { %1019 = vst [vmem:[%s1637_s10] sm:$0xff] %v1014_v2  ;;  %v1253_v53 = vpop.f32.mrb[11].mxu1 }
 0x2f7   :  { %1024 = vsyncpa [#allocation3], 1 }
 0x2f8   :  { %1025 = vsyncpa [#allocation5], 1 }

</bundles_post_ra>
